<compile_context>
chip_gen: v7x
topology: tpu7x:2x2x1
jax: 0.10.0
libtpu: 0.0.40
codegen_flags: <defaults>
</compile_context>

<pallas_src>
import jax
import jax.numpy as jnp
from jax.experimental import pallas as pl
from jax.experimental.pallas import tpu as pltpu

_LANE = 128
_SUBLANE = 8


def _round_up(x, m):
    return ((x + m - 1) // m) * m


def _mlp_kernel(x_ref, w1t_ref, b1_ref, w2t_ref, b2_ref, o_ref):
    # fc1: (tb, In) @ (In, Hp) + (1, Hp), ReLU.  Hp is lane-padded; padded
    # columns have zero weight and zero bias, so ReLU keeps them at 0.
    h = jnp.dot(x_ref[...], w1t_ref[...], preferred_element_type=jnp.float32)
    h = jnp.maximum(h + b1_ref[...], 0.0)
    # fc2: (tb, Hp) @ (Hp, out) + (1, out).  Zero-padded hidden rows of w2t
    # contribute nothing.  Output block is the true width (no lane padding
    # in HBM), so writeback traffic is only the real data.
    y = jnp.dot(h, w2t_ref[...], preferred_element_type=jnp.float32)
    y = y + b2_ref[...]
    o_ref[...] = y.astype(o_ref.dtype)


def prepare_params(w1, b1, w2, b2):
    """One-time layout prep (hoisted out of the per-forward path).

    Torch layout  w1: (hidden, in), b1: (hidden,), w2: (out, hidden), b2: (out,)
      -> w1t: (in, hidden_pad), b1r: (1, hidden_pad),
         w2t: (hidden_pad, out),  b2r: (1, out)
    Only the hidden dim is zero-padded (to a multiple of 128 lanes); the
    output dim keeps its true width.
    """
    hidden, input_size = w1.shape
    output_size = w2.shape[0]
    hp = _round_up(hidden, _LANE)

    w1t = jnp.zeros((input_size, hp), jnp.float32).at[:, :hidden].set(w1.T)
    b1r = jnp.zeros((1, hp), jnp.float32).at[:, :hidden].set(b1)
    w2t = jnp.zeros((hp, output_size), jnp.float32).at[:hidden, :].set(w2.T)
    b2r = b2.reshape(1, output_size).astype(jnp.float32)
    return w1t, b1r, w2t, b2r


def _vmem_capacity_bytes():
    """Per-core VMEM capacity; conservative 64 MiB fallback (v7x per-TC)."""
    try:
        info = pltpu.get_tpu_info()
        cap = getattr(info, "vmem_capacity_bytes", None)
        if cap:
            return int(cap)
    except Exception:
        pass
    return 64 * 1024 * 1024


def _choose_batch_tile(batch, input_size, hp, vmem_cap):
    """Pick the batch tile size (rows per grid step)."""
    # Per-row VMEM footprint: double-buffered x tile, double-buffered output
    # tile (lane-padded to 128 inside VMEM regardless of true width), and the
    # (tb, hp) f32 hidden intermediate.
    row_bytes = 4 * (2 * input_size + 2 * _LANE + hp)
    budget = int(0.40 * vmem_cap)
    gen_cap = 16384 if vmem_cap >= (96 << 20) else 8192   # v5e/v6e vs v7x
    tb_cap = max(_SUBLANE,
                 min(gen_cap, (budget // row_bytes) // _SUBLANE * _SUBLANE))

    if batch <= tb_cap:
        # Whole batch fits one tile.  Split into two even tiles when cheap so
        # grid >= 2 and both v7x TensorCores get work.
        if batch >= 4 * _SUBLANE and batch % (2 * _SUBLANE) == 0:
            return batch // 2
        return batch  # block == full batch dim (always a legal block shape)

    # Large batch: prefer the largest tile (multiple of 8, <= cap) that
    # divides the batch exactly so every block is full (no masked tail).
    tb = tb_cap
    while tb >= _SUBLANE:
        if batch % tb == 0:
            return tb
        tb -= _SUBLANE
    # No exact divisor: use the cap; Pallas masks the uneven last block's
    # out-of-bounds writes, and each output row depends only on its own
    # input row, so the in-bounds rows stay exact.
    return tb_cap


def net_forward(x, w1t, b1r, w2t, b2r):
    """Forward pass of Net with pre-laid-out parameters.

    x: (batch, input_size) float32  ->  (batch, output_size) float32
    """
    batch, input_size = x.shape
    hp = w1t.shape[1]
    out_dim = w2t.shape[1]

    vmem_cap = _vmem_capacity_bytes()
    tb = _choose_batch_tile(batch, input_size, hp, vmem_cap)
    grid = (pl.cdiv(batch, tb),)

    # VMEM limit sized from the actual working set, capped by queried capacity.
    row_bytes = 4 * (2 * input_size + 2 * _LANE + hp)
    weight_bytes = 4 * (input_size * hp + hp + hp * out_dim + out_dim)
    need = int(1.5 * (tb * row_bytes + weight_bytes)) + (1 << 20)
    frac = 0.55 if vmem_cap <= (64 << 20) else 0.75
    vmem_limit = min(max(need, 16 << 20), int(frac * vmem_cap))

    out = pl.pallas_call(
        _mlp_kernel,
        out_shape=jax.ShapeDtypeStruct((batch, out_dim), jnp.float32),
        grid=grid,
        in_specs=[
            # x: one batch tile per grid step (auto double-buffered).
            pl.BlockSpec((tb, input_size), lambda i: (i, 0)),
            # Weights / biases: grid-invariant -> VMEM-resident, no re-DMA.
            pl.BlockSpec((input_size, hp), lambda i: (0, 0)),
            pl.BlockSpec((1, hp), lambda i: (0, 0)),
            pl.BlockSpec((hp, out_dim), lambda i: (0, 0)),
            pl.BlockSpec((1, out_dim), lambda i: (0, 0)),
        ],
        # True output width: last block dim equals the full array dim.
        out_specs=pl.BlockSpec((tb, out_dim), lambda i: (i, 0)),
        compiler_params=pltpu.CompilerParams(
            dimension_semantics=("parallel",),
            vmem_limit_bytes=vmem_limit,
        ),
    )(x, w1t, b1r, w2t, b2r)

    return out


def init_params(key, input_size, hidden, output_size):
    """Deterministic PyTorch-style (uniform +/- 1/sqrt(fan_in)) init."""
    k1, k2, k3, k4 = jax.random.split(key, 4)
    bound1 = 1.0 / jnp.sqrt(jnp.float32(input_size))
    bound2 = 1.0 / jnp.sqrt(jnp.float32(hidden))
    w1 = jax.random.uniform(k1, (hidden, input_size), jnp.float32, -bound1, bound1)
    b1 = jax.random.uniform(k2, (hidden,), jnp.float32, -bound1, bound1)
    w2 = jax.random.uniform(k3, (output_size, hidden), jnp.float32, -bound2, bound2)
    b2 = jax.random.uniform(k4, (output_size,), jnp.float32, -bound2, bound2)
    return w1, b1, w2, b2


if __name__ == "__main__":
    batch, input_size, hidden, output_size = 8, 32, 10, 4

    key = jax.random.PRNGKey(0)
    kx, kp = jax.random.split(key)
    x = jax.random.normal(kx, (batch, input_size), jnp.float32)
    w1, b1, w2, b2 = init_params(kp, input_size, hidden, output_size)

    # One-time parameter layout prep (outside the per-call path).
    w1t, b1r, w2t, b2r = prepare_params(w1, b1, w2, b2)

    y = net_forward(x, w1t, b1r, w2t, b2r)
    y = jax.block_until_ready(y)

    # Reference check in plain JAX (same math as the PyTorch forward).
    ref = jnp.maximum(x @ w1.T + b1, 0.0) @ w2.T + b2
    assert y.shape == (batch, output_size)
    assert jnp.allclose(y, ref, atol=1e-5, rtol=1e-5)

    print("KERNEL_OK")
</pallas_src>

<mosaic_0001>
module attributes {stable_mosaic.version = 11 : i64} {
  func.func @_mlp_kernel(%arg0: i32, %arg1: memref<8x32xf32, #tpu.memory_space<vmem>>, %arg2: memref<32x128xf32, #tpu.memory_space<vmem>>, %arg3: memref<1x128xf32, #tpu.memory_space<vmem>>, %arg4: memref<128x4xf32, #tpu.memory_space<vmem>>, %arg5: memref<1x4xf32, #tpu.memory_space<vmem>>, %arg6: memref<8x4xf32, #tpu.memory_space<vmem>>) attributes {dimension_semantics = [#tpu.dimension_semantics<parallel>], iteration_bounds = array<i64: 1>, scalar_prefetch = 0 : i64, scratch_operands = 0 : i64, tpu.core_type = #tpu.core_type<tc>, window_params = [{transform_indices = @transform_0, window_bounds = array<i64: 8, 32>}, {pipeline_mode = #tpu.pipeline_mode<synchronous>, transform_indices = @transform_1, window_bounds = array<i64: 32, 128>}, {pipeline_mode = #tpu.pipeline_mode<synchronous>, transform_indices = @transform_2, window_bounds = array<i64: 1, 128>}, {pipeline_mode = #tpu.pipeline_mode<synchronous>, transform_indices = @transform_3, window_bounds = array<i64: 128, 4>}, {pipeline_mode = #tpu.pipeline_mode<synchronous>, transform_indices = @transform_4, window_bounds = array<i64: 1, 4>}, {transform_indices = @transform_5, window_bounds = array<i64: 8, 4>}]} {
    %c0 = arith.constant 0 : index
    %c0_0 = arith.constant 0 : index
    %0 = vector.load %arg1[%c0, %c0_0] : memref<8x32xf32, #tpu.memory_space<vmem>>, vector<8x32xf32>
    %c0_1 = arith.constant 0 : index
    %c0_2 = arith.constant 0 : index
    %1 = vector.load %arg2[%c0_1, %c0_2] : memref<32x128xf32, #tpu.memory_space<vmem>>, vector<32x128xf32>
    %cst = arith.constant dense<0.000000e+00> : vector<8x128xf32>
    %2 = tpu.matmul %0, %1, %cst {dimension_numbers = #tpu.dot_dimension_numbers<[1], [0], [0], [1], [0, 0, 1, 1], [], []>} : vector<8x32xf32>, vector<32x128xf32>, vector<8x128xf32> -> vector<8x128xf32>
    %c0_3 = arith.constant 0 : index
    %c0_4 = arith.constant 0 : index
    %3 = vector.load %arg3[%c0_3, %c0_4] : memref<1x128xf32, #tpu.memory_space<vmem>>, vector<1x128xf32>
    %4 = vector.broadcast %3 : vector<1x128xf32> to vector<8x128xf32>
    %5 = arith.addf %2, %4 : vector<8x128xf32>
    %cst_5 = arith.constant 0.000000e+00 : f32
    %6 = vector.broadcast %cst_5 : f32 to vector<8x128xf32>
    %7 = arith.maximumf %5, %6 : vector<8x128xf32>
    %c0_6 = arith.constant 0 : index
    %c0_7 = arith.constant 0 : index
    %8 = vector.load %arg4[%c0_6, %c0_7] : memref<128x4xf32, #tpu.memory_space<vmem>>, vector<128x4xf32>
    %cst_8 = arith.constant dense<0.000000e+00> : vector<8x4xf32>
    %9 = tpu.matmul %7, %8, %cst_8 {dimension_numbers = #tpu.dot_dimension_numbers<[1], [0], [0], [1], [0, 0, 1, 1], [], []>} : vector<8x128xf32>, vector<128x4xf32>, vector<8x4xf32> -> vector<8x4xf32>
    %c0_9 = arith.constant 0 : index
    %c0_10 = arith.constant 0 : index
    %10 = vector.load %arg5[%c0_9, %c0_10] : memref<1x4xf32, #tpu.memory_space<vmem>>, vector<1x4xf32>
    %11 = vector.broadcast %10 : vector<1x4xf32> to vector<8x4xf32>
    %12 = arith.addf %9, %11 : vector<8x4xf32>
    %c0_11 = arith.constant 0 : index
    %c0_12 = arith.constant 0 : index
    %13 = vector.load %arg6[%c0_11, %c0_12] : memref<8x4xf32, #tpu.memory_space<vmem>>, vector<8x4xf32>
    tpu.vector_store %arg6[%c0_11, %c0_12], %12 {strides = array<i32>} : memref<8x4xf32, #tpu.memory_space<vmem>>, vector<8x4xf32>,
    return
  }
  func.func @transform_0(%arg0: i32) -> (i32, i32) {
    %c0_i32 = arith.constant 0 : i32
    %c0_i32_0 = arith.constant 0 : i32
    return %arg0, %c0_i32 : i32, i32
  }
  func.func @transform_1(%arg0: i32) -> (i32, i32) {
    %c0_i32 = arith.constant 0 : i32
    %c0_i32_0 = arith.constant 0 : i32
    %c0_i32_1 = arith.constant 0 : i32
    return %c0_i32, %c0_i32_0 : i32, i32
  }
  func.func @transform_2(%arg0: i32) -> (i32, i32) {
    %c0_i32 = arith.constant 0 : i32
    %c0_i32_0 = arith.constant 0 : i32
    %c0_i32_1 = arith.constant 0 : i32
    return %c0_i32, %c0_i32_0 : i32, i32
  }
  func.func @transform_3(%arg0: i32) -> (i32, i32) {
    %c0_i32 = arith.constant 0 : i32
    %c0_i32_0 = arith.constant 0 : i32
    %c0_i32_1 = arith.constant 0 : i32
    return %c0_i32, %c0_i32_0 : i32, i32
  }
  func.func @transform_4(%arg0: i32) -> (i32, i32) {
    %c0_i32 = arith.constant 0 : i32
    %c0_i32_0 = arith.constant 0 : i32
    %c0_i32_1 = arith.constant 0 : i32
    return %c0_i32, %c0_i32_0 : i32, i32
  }
  func.func @transform_5(%arg0: i32) -> (i32, i32) {
    %c0_i32 = arith.constant 0 : i32
    %c0_i32_0 = arith.constant 0 : i32
    return %arg0, %c0_i32 : i32, i32
  }
}

</mosaic_0001>

<bundles_post_ra>
// kernel: tpu_custom_call.1
= control target key start
LH: loop header
LB: loop body
LE: loop exit
PB: predicated region body
PF: predicated region fallthrough
CT: control target
= control target key end

     0   :  { %v310_v0 = vmov 0.0|0.0   ;;  %vm311_vm0 = vmmov 0   ;;  %v312_v4 = vmov 0.0   ;;  %vm32_vm1 = vcmask 261120   ;;  %s415_s1 = inlined_call_operand.vmem [shape: f32[32,128], index: 1, kind: input, shape index: {}]   ;;  %s416_s3 = inlined_call_operand.vmem [shape: f32[128,4], index: 3, kind: input, shape index: {}]   ;;  %s417_s0 = inlined_call_operand.vmem [shape: f32[8,32], index: 0, kind: input, shape index: {}]   ;;  %s418_s2 = inlined_call_operand.vmem [shape: f32[1,128], index: 2, kind: input, shape index: {}]   ;;  %s419_s4 = inlined_call_operand.vmem [shape: f32[1,4], index: 4, kind: input, shape index: {}]   ;;  %s420_s5 = inlined_call_operand.vmem [shape: f32[8,4], index: 5, kind: output, shape index: {}]  }
   0x1   :  { %277 = vmatprep.subr.bf16.mxu0 %v310_v0  ;;  %v21_v1 = vld [vmem:[%s415_s1] sm:$0xff]  ;;  %v22_v2 = vld [vmem:[%s415_s1 + $0x8] sm:$0xff]  ;;  %v23_v3 = vld [vmem:[%s415_s1 + $0x10] sm:$0xff]  ;;  %239 = vmatprep.mubr.msk.f32.mxu0 %vm311_vm0, %v312_v4  ;;  %vm200_vm2 = vcmask 31744  }
   0x2   :  { %v278_v5 = vpack.c.bf16 %v22_v2, %v21_v1  ;;  %v24_v6 = vld [vmem:[%s415_s1 + $0x18] sm:$0xff]  ;;  %283 = vmatprep.subr.bf16.mxu1 %v310_v0  ;;  %v107_v7 = vld [vmem:[%s416_s3] sm:$0xff]  ;;  %274 = vmatprep.mubr.msk.f32.mxu1 %vm311_vm0, %v312_v4  ;;  %v108_v8 = vld [vmem:[%s416_s3 + $0x8] sm:$0xff] }
   0x3   :  { %v109_v9 = vld [vmem:[%s416_s3 + $0x10] sm:$0xff]  ;;  %v110_v10 = vld [vmem:[%s416_s3 + $0x18] sm:$0xff]  ;;  %v281_v11 = vpack.c.bf16 %v24_v6, %v23_v3  ;;  %v284_v12 = vpack.c.bf16 %v108_v8, %v107_v7  ;;  %v111_v14 = vld [vmem:[%s416_s3 + $0x20] sm:$0xff] }
   0x4   :  { %279 = vmatpush3.bf16.msra.mxu0 %v278_v5  ;;  %v287_v13 = vpack.c.bf16 %v110_v10, %v109_v9  ;;  %v112_v15 = vld [vmem:[%s416_s3 + $0x28] sm:$0xff]  ;;  %v20_v16 = vld [vmem:[%s417_s0] sm:$0xff]  ;;  %v113_v18 = vld [vmem:[%s416_s3 + $0x30] sm:$0xff] }
   0x5   :  { %280 = vmatprep.subr.bf16.mxu0 %v310_v0  ;;  %285 = vmatpush3.bf16.msra.mxu1 %v284_v12  ;;  %v290_v17 = vpack.c.bf16 %v112_v15, %v111_v14  ;;  %v114_v19 = vld [vmem:[%s416_s3 + $0x38] sm:$0xff]  ;;  %v115_v21 = vld [vmem:[%s416_s3 + $0x40] sm:$0xff]  ;;  %v116_v22 = vld [vmem:[%s416_s3 + $0x48] sm:$0xff] }
   0x6   :  { %286 = vmatprep.subr.bf16.mxu1 %v310_v0  ;;  %v293_v20 = vpack.c.bf16 %v114_v19, %v113_v18  ;;  %v296_v23 = vpack.c.bf16 %v116_v22, %v115_v21  ;;  %v117_v24 = vld [vmem:[%s416_s3 + $0x50] sm:$0xff]  ;;  %v118_v25 = vld [vmem:[%s416_s3 + $0x58] sm:$0xff]  ;;  %v119_v27 = vld [vmem:[%s416_s3 + $0x60] sm:$0xff] }
   0x7   :  { %v299_v26 = vpack.c.bf16 %v118_v25, %v117_v24  ;;  %v120_v28 = vld [vmem:[%s416_s3 + $0x68] sm:$0xff]  ;;  %v121_v30 = vld [vmem:[%s416_s3 + $0x70] sm:$0xff]  ;;  %v122_v31 = vld [vmem:[%s416_s3 + $0x78] sm:$0xff] }
   0x8   :  { %282 = vmatpush3.bf16.msra.mxu0 %v281_v11  ;;  %v302_v29 = vpack.c.bf16 %v120_v28, %v119_v27  ;;  %v305_v32 = vpack.c.bf16 %v122_v31, %v121_v30  ;;  %v206_v33 = vld [vmem:[%s418_s2] ss:$0 sm:$0xff] }
   0x9   :  { %288 = vmatpush3.bf16.msra.mxu1 %v287_v13  ;;  %v208_v38 = vld [vmem:[%s419_s4] ss:$0 sm:$0xff] }
   0xa   :  { %289 = vmatprep.subr.bf16.mxu1 %v310_v0 }
   0xb   :  { %240 = vmatmul.mubr.msk.f32.vlgmr.msra.gmra.mrb[0].mxu0 %vm32_vm1, %v20_v16 }
   0xd   :  { %291 = vmatpush3.bf16.msra.mxu1 %v290_v17 }
   0xe   :  { %292 = vmatprep.subr.bf16.mxu1 %v310_v0 }
  0x11   :  { %294 = vmatpush3.bf16.msra.mxu1 %v293_v20 }
  0x12   :  { %295 = vmatprep.subr.bf16.mxu1 %v310_v0 }
  0x15   :  { %297 = vmatpush3.bf16.msra.mxu1 %v296_v23 }
  0x16   :  { %298 = vmatprep.subr.bf16.mxu1 %v310_v0 }
  0x19   :  { %300 = vmatpush3.bf16.msra.mxu1 %v299_v26 }
  0x1a   :  { %301 = vmatprep.subr.bf16.mxu1 %v310_v0 }
  0x1d   :  { %303 = vmatpush3.bf16.msra.mxu1 %v302_v29 }
  0x1e   :  { %304 = vmatprep.subr.bf16.mxu1 %v310_v0 }
  0x21   :  { %306 = vmatpush3.bf16.msra.mxu1 %v305_v32 }
  0xde   :  { %v102_v34 = vpop.f32.mrb[0].mxu0 }
  0xdf   :  { %v103_v35 = vadd.f32 %v206_v33, %v102_v34  ;;  %v241_v36 = vpop.f32.mrb[1].mxu0 }
  0xe1   :  { %v106_v37 = vmax.f32 %v103_v35, 0.0 }
  0xe3   :  { %275 = vmatmul.mubr.f32.vlgmr.msra.gmra.mrb[0].mxu1 %v106_v37 }
 0x1b6   :  { %v196_v39 = vpop.f32.mrb[0].mxu1 }
 0x1b7   :  { %v197_v40 = vadd.f32 %v208_v38, %v196_v39  ;;  %v276_v41 = vpop.f32.mrb[1].mxu1 }
 0x1b9   :  { %201 = vst.msk [vmem:[%s420_s5] sm:$0xff] %vm200_vm2, %v197_v40 }

</bundles_post_ra>
